<compile_context>
chip_gen: v6e
topology: v6e:2x2x1
jax: 0.10.0
libtpu: 0.0.40
codegen_flags: <defaults>
</compile_context>

<pallas_src>
import functools

import jax
import jax.numpy as jnp
from jax.experimental import pallas as pl
from jax.experimental.pallas import tpu as pltpu


_LANE = 128                 # lane width: logdet padded to a multiple of this
_MAX_TILE_LANES = 512 * 1024  # 2 MiB f32 per block; tiny vs. VMEM on all gens


def _flow_logdet_kernel(logdet_ref):
    # Per-sample log|det J| of the identity map is exactly 0.
    # Lane-dense (1, tile) block -> unmasked full-width vector stores.
    logdet_ref[...] = jnp.zeros_like(logdet_ref)


def _flow_logdet_zeros(n: int) -> jax.Array:
    """Per-sample log|det J| (= zeros) for the identity flow, via Pallas."""
    # Lane-dense padded layout: (1, n_pad) with n_pad a multiple of the tile.
    n_lanes = pl.cdiv(n, _LANE) * _LANE
    tile = min(n_lanes, _MAX_TILE_LANES)
    n_pad = pl.cdiv(n_lanes, tile) * tile
    grid = (n_pad // tile,)

    logdet_pad = pl.pallas_call(
        _flow_logdet_kernel,
        out_shape=jax.ShapeDtypeStruct((1, n_pad), jnp.float32),
        grid=grid,
        out_specs=pl.BlockSpec((1, tile), lambda i: (0, i)),
        compiler_params=pltpu.CompilerParams(
            dimension_semantics=("parallel",),
        ),
        cost_estimate=pl.CostEstimate(
            flops=0,
            transcendentals=0,
            bytes_accessed=n_pad * 4,  # the only HBM traffic: the zeros write
        ),
    )()
    return logdet_pad[0, :n]


@functools.partial(jax.jit, static_argnames=("logdetJ",))
def flow_forward(x, logdetJ: bool = False):
    """Base-Flow forward: y = x, logdetJ = zeros(N).  x is NCHW (or any shape
    with a leading batch dim)."""
    # Identity transform: return x as-is -- no copy, no kernel, no HBM traffic.
    if not logdetJ:
        return x

    n = x.shape[0]
    logdet = _flow_logdet_zeros(n)
    return x, logdet


if __name__ == "__main__":
    key = jax.random.PRNGKey(0)
    x = jax.random.normal(key, (2, 4, 16, 16), dtype=jnp.float32)  # NCHW

    y, logdet = flow_forward(x, logdetJ=True)
    jax.block_until_ready((y, logdet))

    assert y.shape == x.shape
    assert logdet.shape == (2,)
    assert jnp.allclose(y, x)
    assert jnp.allclose(logdet, jnp.zeros((2,), dtype=jnp.float32))

    # Also exercise the logdetJ=False path (no pallas_call at all).
    y_only = flow_forward(x)
    jax.block_until_ready(y_only)
    assert jnp.allclose(y_only, x)

    print("KERNEL_OK")
</pallas_src>

<mosaic_0001>
module attributes {stable_mosaic.version = 11 : i64} {
  func.func @_flow_logdet_kernel(%arg0: i32, %arg1: memref<1x128xf32, #tpu.memory_space<vmem>>) attributes {dimension_semantics = [#tpu.dimension_semantics<parallel>], iteration_bounds = array<i64: 1>, scalar_prefetch = 0 : i64, scratch_operands = 0 : i64, tpu.core_type = #tpu.core_type<tc>, window_params = [{transform_indices = @transform_0, window_bounds = array<i64: 1, 128>}]} {
    %cst = arith.constant 0.000000e+00 : f32
    %0 = vector.broadcast %cst : f32 to vector<1x128xf32>
    %c0 = arith.constant 0 : index
    %c0_0 = arith.constant 0 : index
    %1 = vector.load %arg1[%c0, %c0_0] : memref<1x128xf32, #tpu.memory_space<vmem>>, vector<1x128xf32>
    tpu.vector_store %arg1[%c0, %c0_0], %0 {strides = array<i32>} : memref<1x128xf32, #tpu.memory_space<vmem>>, vector<1x128xf32>,
    return
  }
  func.func @transform_0(%arg0: i32) -> (i32, i32) {
    %c0_i32 = arith.constant 0 : i32
    %c0_i32_0 = arith.constant 0 : i32
    return %c0_i32, %arg0 : i32, i32
  }
}

</mosaic_0001>

<bundles_post_ra>
// kernel: flow_forward.1
= control target key start
LH: loop header
LB: loop body
LE: loop exit
PB: predicated region body
PF: predicated region fallthrough
CT: control target
= control target key end

     0   :  { %v11_v0 = vmov 0.0   ;;  %s20_s0 = inlined_call_operand.vmem [shape: f32[1,128], index: 0, kind: output, shape index: {}]  }
   0x1   :  { %5 = vst [vmem:[%s20_s0] sm:$0x1] %v11_v0 }

</bundles_post_ra>
